<compile_context>
chip_gen: v7x
topology: tpu7x:2x2x1
jax: 0.10.0
libtpu: 0.0.40
codegen_flags: <defaults>
</compile_context>

<pallas_src>
import functools

import numpy as np
import jax
import jax.numpy as jnp
from jax.experimental import pallas as pl
from jax.experimental.pallas import tpu as pltpu


def _round_up(x: int, m: int) -> int:
    return ((x + m - 1) // m) * m


# ----------------------------------------------------------------------------
# Operator setup (host-side numpy; deterministic, done once)
# ----------------------------------------------------------------------------
def build_lowpass_operator(h: int, w: int, dtype=np.float32) -> jax.Array:
    """Dense (H*W, H*W) matrix L with  low_flat = x_flat @ L  reproducing exactly:
         X = rfft2(x, norm='ortho'); X[:, :, c_h:, :] = 0; X[:, :, :, c_w:] = 0
         low = irfft2(X, s=(h, w), norm='ortho')
    The op is linear in x; applying it to the identity basis gives its matrix.
    """
    c_h, c_w = h // 2 + 1, w // 2 + 1
    n = h * w
    basis = np.eye(n, dtype=np.float64).reshape(n, h, w)
    spec = np.fft.rfft2(basis, axes=(1, 2), norm="ortho")
    spec[:, c_h:, :] = 0.0
    spec[:, :, c_w:] = 0.0  # no-op when c_w == rfft width; kept for fidelity to the module
    low = np.fft.irfft2(spec, s=(h, w), axes=(1, 2), norm="ortho")
    return jnp.asarray(low.reshape(n, n).astype(dtype))  # L[i, j]: input pixel i -> output pixel j


# ----------------------------------------------------------------------------
# Pallas kernel: low-pass matmul + beta^2 mix + LayerNorm + residual
# ----------------------------------------------------------------------------
def freq_layer_kernel(x_ref, lop_ref, params_ref, o_ref, *, eps):
    x = x_ref[...]                                              # (TM, N) f32
    # Low-pass as a dense operator on the MXU (operator may be bf16; accumulate in f32).
    low = jnp.dot(x.astype(lop_ref.dtype), lop_ref[...],
                  preferred_element_type=jnp.float32)           # (TM, N) f32
    high = x - low
    beta_sq = params_ref[0:1, :]                                # (1, N) broadcasts over batch tile
    gamma = params_ref[1:2, :]
    bias = params_ref[2:3, :]
    seq = low + beta_sq * high
    # TODO(synk): nn.Dropout(0.5) is identity in eval mode; training-mode RNG dropout not emitted.
    # LayerNorm over flattened features (biased variance, eps=1e-12); reductions ride the XLU,
    # rsqrt rides the EUP -> free filler next to MXU/VPU work.
    mean = jnp.mean(seq, axis=-1, keepdims=True)
    cent = seq - mean
    var = jnp.mean(cent * cent, axis=-1, keepdims=True)
    normed = cent * jax.lax.rsqrt(var + eps)
    o_ref[...] = normed * gamma + bias + x                      # residual connection


@functools.partial(jax.jit, static_argnames=("eps", "block_m", "matmul_dtype"))
def frequency_layer(x_nchw, lowpass_op, sqrt_beta, ln_gamma, ln_bias, *,
                    eps=1e-12, block_m=128, matmul_dtype=jnp.float32):
    b, c, h, w = x_nchw.shape
    assert c == 1, "module's LayerNorm(h*w) on view(batch, -1) requires C == 1"
    n = c * h * w

    # ---- layout prep (plain JAX glue) ----
    x_flat = x_nchw.reshape(b, n).astype(jnp.float32)

    # Batch (sublane) tiling: multiple-of-8 tile, capped at block_m; pad batch up to it.
    tm = max(8, _round_up(min(block_m, _round_up(b, 8)), 8))
    b_pad = _round_up(b, tm)
    if b_pad != b:
        x_flat = jnp.pad(x_flat, ((0, b_pad - b), (0, 0)))
    grid = (b_pad // tm,)

    # Operator in matmul dtype (bf16 halves its VMEM footprint / doubles MXU rate on v6e/v7x).
    lop = lowpass_op.astype(matmul_dtype)

    # Pack beta^2 / gamma / bias into one (8, N) f32 slab: one DMA, one resident tile.
    params = jnp.zeros((8, n), jnp.float32)
    params = params.at[0].set((sqrt_beta.astype(jnp.float32) ** 2).reshape(n))
    params = params.at[1].set(ln_gamma.astype(jnp.float32).reshape(n))
    params = params.at[2].set(ln_bias.astype(jnp.float32).reshape(n))

    # Explicit VMEM budget: resident L + double-buffered x/out tiles + params (+ slack).
    vmem_limit = 48 * 1024 * 1024          # > v5e/v6e scoped defaults, < v7x 64 MiB physical
    est = (n * n * jnp.dtype(matmul_dtype).itemsize
           + 2 * 2 * tm * n * 4
           + 8 * n * 4
           + (2 << 20))
    if est > vmem_limit:
        # TODO(synk): K-tile the dense operator (or use the separable H/W factorization) for large H*W.
        raise ValueError("dense (N,N) low-pass operator working set exceeds the 48 MiB VMEM budget")

    kernel = functools.partial(freq_layer_kernel, eps=eps)
    out_flat = pl.pallas_call(
        kernel,
        out_shape=jax.ShapeDtypeStruct((b_pad, n), jnp.float32),
        grid=grid,
        in_specs=[
            pl.BlockSpec((tm, n), lambda i: (i, 0)),   # x: batch-tiled, auto-pipelined
            pl.BlockSpec((n, n), lambda i: (0, 0)),    # L: constant block -> DMA'd once, VMEM-resident
            pl.BlockSpec((8, n), lambda i: (0, 0)),    # packed beta^2 / gamma / bias
        ],
        out_specs=pl.BlockSpec((tm, n), lambda i: (i, 0)),
        input_output_aliases={0: 0},                   # reuse x's (padded) HBM buffer for the output
        compiler_params=pltpu.CompilerParams(
            dimension_semantics=("parallel",),         # shard batch tiles across TCs on v7x
            vmem_limit_bytes=vmem_limit,
        ),
    )(x_flat, lop, params)

    return out_flat[:b].reshape(b, c, h, w)


# ----------------------------------------------------------------------------
# Host-side (numpy, float64) reference mirroring the PyTorch forward
# ----------------------------------------------------------------------------
def reference_np(x, sqrt_beta, ln_gamma, ln_bias, eps=1e-12):
    x = np.asarray(x, np.float64)
    b, c, h, w = x.shape
    c_h, c_w = h // 2 + 1, w // 2 + 1
    spec = np.fft.rfft2(x, axes=(2, 3), norm="ortho")
    spec[:, :, c_h:, :] = 0.0
    spec[:, :, :, c_w:] = 0.0
    low = np.fft.irfft2(spec, s=(h, w), axes=(2, 3), norm="ortho")
    high = x - low
    seq = low + np.asarray(sqrt_beta, np.float64) ** 2 * high
    flat = seq.reshape(b, -1)
    mean = flat.mean(-1, keepdims=True)
    var = ((flat - mean) ** 2).mean(-1, keepdims=True)
    normed = (flat - mean) / np.sqrt(var + eps)
    normed = normed * np.asarray(ln_gamma, np.float64).reshape(1, -1) \
        + np.asarray(ln_bias, np.float64).reshape(1, -1)
    return normed.reshape(b, c, h, w) + x


if __name__ == "__main__":
    B, C, H, W = 2, 1, 16, 16   # the module's LayerNorm(h*w) on view(batch, -1) implies C == 1
    key = jax.random.PRNGKey(0)
    k_x, k_beta, k_g, k_b = jax.random.split(key, 4)

    x = jax.random.normal(k_x, (B, C, H, W), dtype=jnp.float32)
    # Parameters with the module's shapes (values arbitrary since they are learnable):
    sqrt_beta = jax.random.normal(k_beta, (1, 1, H, W), dtype=jnp.float32)      # nn.Parameter(randn)
    ln_gamma = 1.0 + 0.1 * jax.random.normal(k_g, (H * W,), dtype=jnp.float32)  # LayerNorm weight
    ln_bias = 0.1 * jax.random.normal(k_b, (H * W,), dtype=jnp.float32)         # LayerNorm bias

    lowpass_op = build_lowpass_operator(H, W)
    ref = reference_np(np.asarray(x), np.asarray(sqrt_beta), np.asarray(ln_gamma), np.asarray(ln_bias))

    # Exact path (f32 MXU) — must match the float64 host reference tightly.
    out = jax.block_until_ready(frequency_layer(x, lowpass_op, sqrt_beta, ln_gamma, ln_bias))
    assert out.shape == (B, C, H, W)
    err = float(np.max(np.abs(np.asarray(out) - ref)))
    assert np.allclose(np.asarray(out), ref, atol=1e-3, rtol=1e-3), err

    # bf16-operator path (v6e/v7x throughput option); looser tolerance from bf16 mantissa,
    # exactness already proven by the f32 path above.
    out_bf16 = jax.block_until_ready(
        frequency_layer(x, lowpass_op, sqrt_beta, ln_gamma, ln_bias, matmul_dtype=jnp.bfloat16))
    err_bf16 = float(np.max(np.abs(np.asarray(out_bf16) - ref)))
    assert np.allclose(np.asarray(out_bf16), ref, atol=1.5e-1, rtol=1.5e-1), err_bf16

    print("KERNEL_OK")
</pallas_src>

<mosaic_0001>
module attributes {stable_mosaic.version = 11 : i64} {
  func.func @freq_layer_kernel(%arg0: i32, %arg1: memref<8x256xf32, #tpu.memory_space<vmem>>, %arg2: memref<256x256xf32, #tpu.memory_space<vmem>>, %arg3: memref<8x256xf32, #tpu.memory_space<vmem>>, %arg4: memref<8x256xf32, #tpu.memory_space<vmem>>) attributes {dimension_semantics = [#tpu.dimension_semantics<parallel>], iteration_bounds = array<i64: 1>, scalar_prefetch = 0 : i64, scratch_operands = 0 : i64, tpu.core_type = #tpu.core_type<tc>, window_params = [{transform_indices = @transform_0, window_bounds = array<i64: 8, 256>}, {pipeline_mode = #tpu.pipeline_mode<synchronous>, transform_indices = @transform_1, window_bounds = array<i64: 256, 256>}, {pipeline_mode = #tpu.pipeline_mode<synchronous>, transform_indices = @transform_2, window_bounds = array<i64: 8, 256>}, {transform_indices = @transform_3, window_bounds = array<i64: 8, 256>}]} {
    %c0 = arith.constant 0 : index
    %c0_0 = arith.constant 0 : index
    %0 = vector.load %arg1[%c0, %c0_0] : memref<8x256xf32, #tpu.memory_space<vmem>>, vector<8x256xf32>
    %c0_1 = arith.constant 0 : index
    %c0_2 = arith.constant 0 : index
    %1 = vector.load %arg2[%c0_1, %c0_2] : memref<256x256xf32, #tpu.memory_space<vmem>>, vector<256x256xf32>
    %cst = arith.constant dense<0.000000e+00> : vector<8x256xf32>
    %2 = tpu.matmul %0, %1, %cst {dimension_numbers = #tpu.dot_dimension_numbers<[1], [0], [0], [1], [0, 0, 1, 1], [], []>} : vector<8x256xf32>, vector<256x256xf32>, vector<8x256xf32> -> vector<8x256xf32>
    %3 = arith.subf %0, %2 : vector<8x256xf32>
    %c0_3 = arith.constant 0 : index
    %c0_4 = arith.constant 0 : index
    %4 = vector.load %arg3[%c0_3, %c0_4] : memref<8x256xf32, #tpu.memory_space<vmem>>, vector<1x256xf32>
    %c1 = arith.constant 1 : index
    %c0_5 = arith.constant 0 : index
    %5 = vector.load %arg3[%c1, %c0_5] : memref<8x256xf32, #tpu.memory_space<vmem>>, vector<1x256xf32>
    %c2 = arith.constant 2 : index
    %c0_6 = arith.constant 0 : index
    %6 = vector.load %arg3[%c2, %c0_6] : memref<8x256xf32, #tpu.memory_space<vmem>>, vector<1x256xf32>
    %7 = vector.broadcast %4 : vector<1x256xf32> to vector<8x256xf32>
    %8 = arith.mulf %7, %3 : vector<8x256xf32>
    %9 = arith.addf %2, %8 : vector<8x256xf32>
    %cst_7 = arith.constant dense<0.000000e+00> : vector<8xf32>
    %10 = vector.multi_reduction <add>, %9, %cst_7 [1] : vector<8x256xf32> to vector<8xf32>
    %11 = vector.shape_cast %10 : vector<8xf32> to vector<8x1xf32>
    %cst_8 = arith.constant 2.560000e+02 : f32
    %12 = vector.broadcast %cst_8 : f32 to vector<8x1xf32>
    %13 = arith.divf %11, %12 : vector<8x1xf32>
    %14 = vector.broadcast %13 : vector<8x1xf32> to vector<8x256xf32>
    %15 = arith.subf %9, %14 : vector<8x256xf32>
    %16 = arith.mulf %15, %15 : vector<8x256xf32>
    %cst_9 = arith.constant dense<0.000000e+00> : vector<8xf32>
    %17 = vector.multi_reduction <add>, %16, %cst_9 [1] : vector<8x256xf32> to vector<8xf32>
    %18 = vector.shape_cast %17 : vector<8xf32> to vector<8x1xf32>
    %cst_10 = arith.constant 2.560000e+02 : f32
    %19 = vector.broadcast %cst_10 : f32 to vector<8x1xf32>
    %20 = arith.divf %18, %19 : vector<8x1xf32>
    %cst_11 = arith.constant 9.99999996E-13 : f32
    %21 = vector.broadcast %cst_11 : f32 to vector<8x1xf32>
    %22 = arith.addf %20, %21 : vector<8x1xf32>
    %23 = math.rsqrt %22 : vector<8x1xf32>
    %24 = vector.broadcast %23 : vector<8x1xf32> to vector<8x256xf32>
    %25 = arith.mulf %15, %24 : vector<8x256xf32>
    %26 = vector.broadcast %5 : vector<1x256xf32> to vector<8x256xf32>
    %27 = arith.mulf %25, %26 : vector<8x256xf32>
    %28 = vector.broadcast %6 : vector<1x256xf32> to vector<8x256xf32>
    %29 = arith.addf %27, %28 : vector<8x256xf32>
    %30 = arith.addf %29, %0 : vector<8x256xf32>
    %c0_12 = arith.constant 0 : index
    %c0_13 = arith.constant 0 : index
    %31 = vector.load %arg4[%c0_12, %c0_13] : memref<8x256xf32, #tpu.memory_space<vmem>>, vector<8x256xf32>
    tpu.vector_store %arg4[%c0_12, %c0_13], %30 {strides = array<i32>} : memref<8x256xf32, #tpu.memory_space<vmem>>, vector<8x256xf32>,
    return
  }
  func.func @transform_0(%arg0: i32) -> (i32, i32) {
    %c0_i32 = arith.constant 0 : i32
    %c0_i32_0 = arith.constant 0 : i32
    return %arg0, %c0_i32 : i32, i32
  }
  func.func @transform_1(%arg0: i32) -> (i32, i32) {
    %c0_i32 = arith.constant 0 : i32
    %c0_i32_0 = arith.constant 0 : i32
    %c0_i32_1 = arith.constant 0 : i32
    return %c0_i32, %c0_i32_0 : i32, i32
  }
  func.func @transform_2(%arg0: i32) -> (i32, i32) {
    %c0_i32 = arith.constant 0 : i32
    %c0_i32_0 = arith.constant 0 : i32
    %c0_i32_1 = arith.constant 0 : i32
    return %c0_i32, %c0_i32_0 : i32, i32
  }
  func.func @transform_3(%arg0: i32) -> (i32, i32) {
    %c0_i32 = arith.constant 0 : i32
    %c0_i32_0 = arith.constant 0 : i32
    return %arg0, %c0_i32 : i32, i32
  }
}

</mosaic_0001>

<bundles_post_ra>
// kernel: integer_pow.1
= control target key start
LH: loop header
LB: loop body
LE: loop exit
PB: predicated region body
PF: predicated region fallthrough
CT: control target
= control target key end

     0   :  { %s56_s0 = inlined_call_operand.vmem [shape: f32[1,1,16,16], index: 0, kind: input, shape index: {}, may-alias: {0,1}]   ;;  %s57_s1 = inlined_call_operand.vmem [shape: f32[1,1,16,16], index: 1, kind: input, shape index: {}, may-alias: {0,1}]   ;;  %s58_s2 = inlined_call_operand.vmem [shape: f32[1,1,16,16], index: 2, kind: output, shape index: {}]  }
   0x1   :  { %v3_v0 = vld [vmem:[%s56_s0] sm:$0xff]  ;;  %v20_v2 = vld [vmem:[%s56_s0 + $0x8] sm:$0xff] }
   0x2   :  { %v4_v1 = vld [vmem:[%s57_s1] sm:$0xff]  ;;  %v21_v4 = vld [vmem:[%s57_s1 + $0x8] sm:$0xff] }
   0x3   :  { %v7_v3 = vmul.f32 %v4_v1, %v3_v0  ;;  %v16_v5 = vmul.f32 %v21_v4, %v20_v2 }
   0x5   :  { %9 = vst [vmem:[%s58_s2] sm:$0xff] %v7_v3  ;;  %22 = vst [vmem:[%s58_s2 + $0x8] sm:$0xff] %v16_v5 }

// kernel: frequency_layer.1
= control target key start
LH: loop header
LB: loop body
LE: loop exit
PB: predicated region body
PF: predicated region fallthrough
CT: control target
= control target key end

     0   :  { %8 = vsyncpa [#allocation3], 0  ;;  %s334_s12 = smov [#allocation2]   ;;  %s395_s0 = inlined_call_operand.vmem [shape: f32[8,256], index: 0, kind: input, shape index: {}, may-alias: {0,3}]   ;;  %s396_s1 = inlined_call_operand.hbm [shape: f32[256,256], index: 1, kind: input, shape index: {}]   ;;  %s397_s2 = inlined_call_operand.vmem [shape: f32[8,256], index: 2, kind: input, shape index: {}]   ;;  %s398_s3 = inlined_call_operand.vmem [shape: f32[8,256], index: 3, kind: output, shape index: {}, may-alias: {0,3}]  }
   0x1   :  { %s16_s13 = sshll.u32 %s334_s12, 4  ;;  %s310_s16 = scalar_lea.hbm %s396_s1, 8192  ;;  %s17_s13 = int_to_ptr.vmem [resolvable:$true] %s16_s13 }
   0x2   :  { %p311_p0 = scmp.ne.s32.totalorder %s396_s1, %s310_s16  ;;  %p314_p1 = scmp.lt.u32.totalorder %s310_s16, %s396_s1 }
   0x4   :  { %p316_p2 = pnand %p314_p1, %p311_p0 }
   0x6   :  { %319 = shalt.err (!%p316_p2)
}
   0x7   :  { %s320_s21 = scalar_lea.vmem %s17_s13, 8192  ;;  %p325_p4 = scmp.lt.s32.totalorder %s17_s13, %s17_s13 }
   0x8   :  { %p321_p3 = scmp.ne.s32.totalorder %s17_s13, %s320_s21  ;;  %p326_p5 = scmp.lt.s32.totalorder %s320_s21, %s320_s21 }
   0xa   :  { %p327_p6 = por %p326_p5, %p325_p4 }
   0xc   :  { %p328_p7 = pnand %p327_p6, %p321_p3 }
   0xe   :  { %331 = shalt.err (!%p328_p7)
}
   0xf   :  { %s335_s22 = smov 256   ;;  %s336_s23 = smov 16  }
  0x10   :  { %22 = dma.hbm_to_vmem [thread:$0]  %s396_s1, 8192, %s17_s13, [#allocation3], %s335_s22, %s335_s22, %s336_s23  }
  0x11   :  { %332 = dma.done.wait [#allocation3], 8192  }
  0x12   :  { %333 = vsyncadd [#allocation3], 4294959104  ;;  %v31_v0 = vld [vmem:[#allocation2 + $0x8] sm:$0xff]  ;;  %v33_v1 = vld [vmem:[#allocation2 + $0x18] sm:$0xff] }
  0x13   :  { %v30_v2 = vld [vmem:[#allocation2] sm:$0xff]  ;;  %v241_v3 = vpack.c.bf16 %v33_v1, %v31_v0  ;;  %v32_v4 = vld [vmem:[#allocation2 + $0x10] sm:$0xff]  ;;  %v35_v5 = vld [vmem:[#allocation2 + $0x28] sm:$0xff] }
  0x14   :  { %v37_v6 = vld [vmem:[#allocation2 + $0x38] sm:$0xff]  ;;  %v243_v7 = vpack.c.bf16 %v32_v4, %v30_v2  ;;  %v34_v9 = vld [vmem:[#allocation2 + $0x20] sm:$0xff]  ;;  %v36_v10 = vld [vmem:[#allocation2 + $0x30] sm:$0xff] }
  0x15   :  { %v245_v8 = vpack.c.bf16 %v37_v6, %v35_v5  ;;  %v39_v11 = vld [vmem:[#allocation2 + $0x48] sm:$0xff]  ;;  %242 = vmatprep.subr.bf16.mxu0 %v241_v3  ;;  %v41_v12 = vld [vmem:[#allocation2 + $0x58] sm:$0xff]  ;;  %v247_v13 = vpack.c.bf16 %v36_v10, %v34_v9  ;;  %v38_v15 = vld [vmem:[#allocation2 + $0x40] sm:$0xff] }
  0x16   :  { %244 = vmatpush1.bf16.msra.mxu0 %v243_v7  ;;  %v249_v14 = vpack.c.bf16 %v41_v12, %v39_v11  ;;  %v40_v16 = vld [vmem:[#allocation2 + $0x50] sm:$0xff]  ;;  %v43_v17 = vld [vmem:[#allocation2 + $0x68] sm:$0xff]  ;;  %v45_v18 = vld [vmem:[#allocation2 + $0x78] sm:$0xff] }
  0x17   :  { %246 = vmatprep.subr.bf16.mxu0 %v245_v8  ;;  %v251_v19 = vpack.c.bf16 %v40_v16, %v38_v15  ;;  %v253_v20 = vpack.c.bf16 %v45_v18, %v43_v17  ;;  %v42_v21 = vld [vmem:[#allocation2 + $0x60] sm:$0xff]  ;;  %v44_v22 = vld [vmem:[#allocation2 + $0x70] sm:$0xff]  ;;  %v47_v23 = vld [vmem:[#allocation2 + $0x88] sm:$0xff] }
  0x18   :  { %v49_v24 = vld [vmem:[#allocation2 + $0x98] sm:$0xff]  ;;  %v255_v25 = vpack.c.bf16 %v44_v22, %v42_v21  ;;  %v46_v27 = vld [vmem:[#allocation2 + $0x80] sm:$0xff]  ;;  %v48_v28 = vld [vmem:[#allocation2 + $0x90] sm:$0xff] }
  0x19   :  { %v257_v26 = vpack.c.bf16 %v49_v24, %v47_v23  ;;  %v51_v29 = vld [vmem:[#allocation2 + $0xa8] sm:$0xff]  ;;  %v53_v30 = vld [vmem:[#allocation2 + $0xb8] sm:$0xff]  ;;  %v259_v31 = vpack.c.bf16 %v48_v28, %v46_v27  ;;  %v50_v33 = vld [vmem:[#allocation2 + $0xa0] sm:$0xff] }
  0x1a   :  { %248 = vmatpush1.bf16.msra.mxu0 %v247_v13  ;;  %v261_v32 = vpack.c.bf16 %v53_v30, %v51_v29  ;;  %v52_v34 = vld [vmem:[#allocation2 + $0xb0] sm:$0xff]  ;;  %v55_v35 = vld [vmem:[#allocation2 + $0xc8] sm:$0xff]  ;;  %v57_v36 = vld [vmem:[#allocation2 + $0xd8] sm:$0xff] }
  0x1b   :  { %250 = vmatprep.subr.bf16.mxu0 %v249_v14  ;;  %v263_v37 = vpack.c.bf16 %v52_v34, %v50_v33  ;;  %v265_v38 = vpack.c.bf16 %v57_v36, %v55_v35  ;;  %v54_v39 = vld [vmem:[#allocation2 + $0xc0] sm:$0xff]  ;;  %v56_v40 = vld [vmem:[#allocation2 + $0xd0] sm:$0xff]  ;;  %v372_v41 = vld [vmem:[%s395_s0 + $0x8] sm:$0xff]  ;;  %v173_v34 = vlaneseq }
  0x1c   :  { %v59_v42 = vld [vmem:[#allocation2 + $0xe8] sm:$0xff]  ;;  %v61_v43 = vld [vmem:[#allocation2 + $0xf8] sm:$0xff]  ;;  %158 = vmatprep.mubr.f32.mxu0 %v372_v41  ;;  %v267_v44 = vpack.c.bf16 %v56_v40, %v54_v39  ;;  %v58_v46 = vld [vmem:[#allocation2 + $0xe0] sm:$0xff] }
  0x1d   :  { %v269_v45 = vpack.c.bf16 %v61_v43, %v59_v42  ;;  %v60_v47 = vld [vmem:[#allocation2 + $0xf0] sm:$0xff]  ;;  %v63_v48 = vld [vmem:[#allocation2 + $0x108] sm:$0xff]  ;;  %v65_v49 = vld [vmem:[#allocation2 + $0x118] sm:$0xff]  ;;  %v174_v35 = vshrl.u32 %v173_v34, 7 }
  0x1e   :  { %252 = vmatpush1.bf16.msra.mxu0 %v251_v19  ;;  %v271_v50 = vpack.c.bf16 %v60_v47, %v58_v46  ;;  %v273_v51 = vpack.c.bf16 %v65_v49, %v63_v48  ;;  %v62_v52 = vld [vmem:[#allocation2 + $0x100] sm:$0xff]  ;;  %v64_v53 = vld [vmem:[#allocation2 + $0x110] sm:$0xff]  ;;  %v67_v54 = vld [vmem:[#allocation2 + $0x128] sm:$0xff] }
  0x1f   :  { %254 = vmatprep.subr.bf16.mxu0 %v253_v20  ;;  %v69_v55 = vld [vmem:[#allocation2 + $0x138] sm:$0xff]  ;;  %v275_v56 = vpack.c.bf16 %v64_v53, %v62_v52  ;;  %v66_v58 = vld [vmem:[#allocation2 + $0x120] sm:$0xff]  ;;  %v68_v59 = vld [vmem:[#allocation2 + $0x130] sm:$0xff]  ;;  %v175_v36 = vsub.s32 0, %v174_v35 }
  0x20   :  { %v277_v57 = vpack.c.bf16 %v69_v55, %v67_v54  ;;  %v71_v60 = vld [vmem:[#allocation2 + $0x148] sm:$0xff]  ;;  %v73_v61 = vld [vmem:[#allocation2 + $0x158] sm:$0xff]  ;;  %v279_v62 = vpack.c.bf16 %v68_v59, %v66_v58  ;;  %v70_v0 = vld [vmem:[#allocation2 + $0x140] sm:$0xff] }
  0x21   :  { %v281_v63 = vpack.c.bf16 %v73_v61, %v71_v60  ;;  %v72_v1 = vld [vmem:[#allocation2 + $0x150] sm:$0xff]  ;;  %v75_v2 = vld [vmem:[#allocation2 + $0x168] sm:$0xff]  ;;  %v77_v3 = vld [vmem:[#allocation2 + $0x178] sm:$0xff] }
  0x22   :  { %256 = vmatpush1.bf16.msra.mxu0 %v255_v25  ;;  %v283_v4 = vpack.c.bf16 %v72_v1, %v70_v0  ;;  %v285_v5 = vpack.c.bf16 %v77_v3, %v75_v2  ;;  %v74_v6 = vld [vmem:[#allocation2 + $0x160] sm:$0xff]  ;;  %v76_v7 = vld [vmem:[#allocation2 + $0x170] sm:$0xff]  ;;  %v79_v8 = vld [vmem:[#allocation2 + $0x188] sm:$0xff] }
  0x23   :  { %258 = vmatprep.subr.bf16.mxu0 %v257_v26  ;;  %v81_v9 = vld [vmem:[#allocation2 + $0x198] sm:$0xff]  ;;  %v287_v10 = vpack.c.bf16 %v76_v7, %v74_v6  ;;  %v78_v12 = vld [vmem:[#allocation2 + $0x180] sm:$0xff]  ;;  %v80_v13 = vld [vmem:[#allocation2 + $0x190] sm:$0xff] }
  0x24   :  { %v289_v11 = vpack.c.bf16 %v81_v9, %v79_v8  ;;  %v83_v14 = vld [vmem:[#allocation2 + $0x1a8] sm:$0xff]  ;;  %v85_v15 = vld [vmem:[#allocation2 + $0x1b8] sm:$0xff]  ;;  %v291_v16 = vpack.c.bf16 %v80_v13, %v78_v12  ;;  %v82_v18 = vld [vmem:[#allocation2 + $0x1a0] sm:$0xff] }
  0x25   :  { %v293_v17 = vpack.c.bf16 %v85_v15, %v83_v14  ;;  %v84_v19 = vld [vmem:[#allocation2 + $0x1b0] sm:$0xff]  ;;  %v87_v20 = vld [vmem:[#allocation2 + $0x1c8] sm:$0xff]  ;;  %v89_v21 = vld [vmem:[#allocation2 + $0x1d8] sm:$0xff] }
  0x26   :  { %260 = vmatpush1.bf16.msra.mxu0 %v259_v31  ;;  %v295_v22 = vpack.c.bf16 %v84_v19, %v82_v18  ;;  %v297_v23 = vpack.c.bf16 %v89_v21, %v87_v20  ;;  %v86_v24 = vld [vmem:[#allocation2 + $0x1c0] sm:$0xff]  ;;  %v88_v25 = vld [vmem:[#allocation2 + $0x1d0] sm:$0xff]  ;;  %v91_v26 = vld [vmem:[#allocation2 + $0x1e8] sm:$0xff] }
  0x27   :  { %262 = vmatprep.subr.bf16.mxu0 %v261_v32  ;;  %v93_v27 = vld [vmem:[#allocation2 + $0x1f8] sm:$0xff]  ;;  %v299_v28 = vpack.c.bf16 %v88_v25, %v86_v24  ;;  %v90_v30 = vld [vmem:[#allocation2 + $0x1e0] sm:$0xff]  ;;  %v92_v31 = vld [vmem:[#allocation2 + $0x1f0] sm:$0xff] }
  0x28   :  { %v301_v29 = vpack.c.bf16 %v93_v27, %v91_v26  ;;  %v303_v32 = vpack.c.bf16 %v92_v31, %v90_v30  ;;  %v28_v33 = vld [vmem:[%s395_s0] sm:$0xff] }
  0x29   :  { %v239_v61 = vld [vmem:[%s397_s2 + $0x1] ss:$8 sm:$0x3] }
  0x2a   :  { %264 = vmatpush1.bf16.msra.mxu0 %v263_v37  ;;  %v167_v37 = vld [vmem:[%s397_s2] ss:$8 sm:$0x3] }
  0x2b   :  { %266 = vmatprep.subr.bf16.mxu0 %v265_v38  ;;  %v179_v38 = vsub.s32 1, %v174_v35  ;;  %v176_v39 = vrot.slane %v167_v37, %v175_v36 }
  0x2d   :  { %v180_v42 = vrot.slane %v167_v37, %v179_v38  ;;  %v212_v0 = vrot.slane %v239_v61, %v179_v38 }
  0x2e   :  { %268 = vmatpush1.bf16.msra.mxu0 %v267_v44 }
  0x2f   :  { %270 = vmatprep.subr.bf16.mxu0 %v269_v45 }
  0x32   :  { %272 = vmatpush1.bf16.msra.mxu0 %v271_v50 }
  0x33   :  { %274 = vmatprep.subr.bf16.mxu0 %v273_v51 }
  0x36   :  { %276 = vmatpush1.bf16.msra.mxu0 %v275_v56 }
  0x37   :  { %278 = vmatprep.subr.bf16.mxu0 %v277_v57 }
  0x3a   :  { %280 = vmatpush1.bf16.msra.mxu0 %v279_v62  ;;  %v240_v62 = vld [vmem:[%s397_s2 + $0x2] ss:$8 sm:$0x3] }
  0x3b   :  { %282 = vmatprep.subr.bf16.mxu0 %v281_v63  ;;  %v208_v63 = vrot.slane %v239_v61, %v175_v36  ;;  %v221_v2 = vrot.slane %v240_v62, %v175_v36  ;;  %v225_v3 = vrot.slane %v240_v62, %v179_v38 }
  0x3e   :  { %284 = vmatpush1.bf16.msra.mxu0 %v283_v4 }
  0x3f   :  { %286 = vmatprep.subr.bf16.mxu0 %v285_v5 }
  0x42   :  { %288 = vmatpush1.bf16.msra.mxu0 %v287_v10 }
  0x43   :  { %290 = vmatprep.subr.bf16.mxu0 %v289_v11 }
  0x46   :  { %292 = vmatpush1.bf16.msra.mxu0 %v291_v16 }
  0x47   :  { %294 = vmatprep.subr.bf16.mxu0 %v293_v17 }
  0x4a   :  { %296 = vmatpush1.bf16.msra.mxu0 %v295_v22 }
  0x4b   :  { %298 = vmatprep.subr.bf16.mxu0 %v297_v23 }
  0x4e   :  { %300 = vmatpush1.bf16.msra.mxu0 %v299_v28 }
  0x4f   :  { %302 = vmatprep.subr.bf16.mxu0 %v301_v29 }
  0x52   :  { %304 = vmatpush1.bf16.msra.mxu0 %v303_v32 }
  0x55   :  { %159 = vmatmul.mubr.f32.vlgmr.msra.gmra.mrb[0].mxu0 %v28_v33 }
 0x128   :  { %v160_v40 = vpop.f32.mrb[0].mxu0 }
 0x129   :  { %v165_v43 = vsub.f32 %v28_v33, %v160_v40  ;;  %v162_v44 = vpop.f32.mrb[1].mxu0 }
 0x12a   :  { %v166_v45 = vsub.f32 %v372_v41, %v162_v44 }
 0x12b   :  { %v183_v46 = vmul.f32 %v176_v39, %v165_v43 }
 0x12c   :  { %v184_v47 = vmul.f32 %v180_v42, %v166_v45 }
 0x12d   :  { %v185_v48 = vadd.f32 %v183_v46, %v160_v40 }
 0x12e   :  { %v186_v49 = vadd.f32 %v184_v47, %v162_v44 }
 0x130   :  { %v187_v50 = vadd.f32 %v186_v49, %v185_v48 }
 0x132   :  { %188 = vadd.xlane.f32.xlu0 %v187_v50 }
 0x1bf   :  { %v189_v51 = vpop.xlane.xlu0 %188 }
 0x1c0   :  { %v191_v52 = vmul.f32 0.00390625, %v189_v51 }
 0x1c2   :  { %v192_v53 = vsub.f32 %v185_v48, %v191_v52  ;;  %v193_v54 = vsub.f32 %v186_v49, %v191_v52 }
 0x1c4   :  { %v194_v55 = vmul.f32 %v192_v53, %v192_v53  ;;  %v195_v56 = vmul.f32 %v193_v54, %v193_v54 }
 0x1c6   :  { %v196_v57 = vadd.f32 %v195_v56, %v194_v55 }
 0x1c8   :  { %197 = vadd.xlane.f32.xlu0 %v196_v57 }
 0x255   :  { %v198_v58 = vpop.xlane.xlu0 %197 }
 0x256   :  { %v199_v59 = vmul.f32 0.00390625, %v198_v58 }
 0x258   :  { %v200_v60 = vadd.f32 1e-12, %v199_v59 }
 0x25a   :  { %308 = vrsqrt.f32 %v200_v60 }
 0x264   :  { %v309_v1 = vpop.eup %308 }
 0x265   :  { %v202_v4 = vmul.f32 %v309_v1, %v192_v53  ;;  %v203_v5 = vmul.f32 %v309_v1, %v193_v54 }
 0x267   :  { %v215_v6 = vmul.f32 %v208_v63, %v202_v4  ;;  %v216_v7 = vmul.f32 %v212_v0, %v203_v5 }
 0x269   :  { %v228_v8 = vadd.f32 %v221_v2, %v215_v6  ;;  %v229_v9 = vadd.f32 %v225_v3, %v216_v7 }
 0x26b   :  { %v230_v10 = vadd.f32 %v228_v8, %v28_v33  ;;  %v231_v11 = vadd.f32 %v229_v9, %v372_v41 }
 0x26d   :  { %232 = vst [vmem:[%s398_s3] sm:$0xff] %v230_v10  ;;  %233 = vst [vmem:[%s398_s3 + $0x8] sm:$0xff] %v231_v11 }
 0x26e   :  { %238 = vsyncpa [#allocation3], 1 }

</bundles_post_ra>
